<compile_context>
chip_gen: v7x
topology: tpu7x:2x2x1
jax: 0.10.0
libtpu: 0.0.40
codegen_flags: <defaults>
</compile_context>

<pallas_src>
import jax
import jax.numpy as jnp
from jax import lax
from jax.experimental import pallas as pl
from jax.experimental.pallas import tpu as pltpu


def rnn_kernel(x_ref, w_xh_ref, w_hh_ref, bh_ref, w_xo_ref, w_ho_ref, bo_ref,
               out_ref, xproj_ref):
    b_pad = out_ref.shape[0]
    h_pad = w_hh_ref.shape[1]
    seq_len = x_ref.shape[0] // b_pad

    # (1) Input projection for every timestep in one MXU pass, i2h bias folded
    #     in so the recurrence has no per-step bias add.
    xproj_ref[...] = (
        jnp.dot(x_ref[...], w_xh_ref[...], preferred_element_type=jnp.float32)
        + bh_ref[...])

    # (2) Serial recurrence with h carried in registers (one (8,128) vreg).
    #     h_1     = xproj[0]                      (h_0 = 0, W_hh matmul skipped)
    #     h_{t+1} = xproj[t] + h_t @ W_hh         for t = 1 .. T-2
    #     The hidden produced at the final step is never consumed -> skipped.
    if seq_len > 1:
        h0 = xproj_ref[pl.ds(0, b_pad), :]

        def step(t, h):
            off = pl.multiple_of(t * b_pad, b_pad)
            x_t = xproj_ref[pl.ds(off, b_pad), :]   # no dependence on h -> overlaps matmul
            # Same W_hh tile every step; Mosaic hoists the RHS load out of the
            # unrolled loop.  (pltpu.matmul_push_rhs/acc_lhs/pop is the next
            # lever if the dump shows per-step weight reloads.)
            return x_t + jnp.dot(h, w_hh_ref[...],
                                 preferred_element_type=jnp.float32)

        h = lax.fori_loop(1, seq_len - 1, step, h0,
                          unroll=min(8, max(seq_len - 2, 1)))
    else:
        h = jnp.zeros((b_pad, h_pad), jnp.float32)

    # (3) Epilogue: i2o on the last step's [x_{T-1} | h_{T-1}] + log_softmax.
    #     Padded logit lanes sit at -1e30 (not -inf) -> exp underflows to 0.
    x_last = x_ref[pl.ds((seq_len - 1) * b_pad, b_pad), :]
    logits = (jnp.dot(x_last, w_xo_ref[...], preferred_element_type=jnp.float32)
              + jnp.dot(h, w_ho_ref[...], preferred_element_type=jnp.float32)
              + bo_ref[...])
    m = jnp.max(logits, axis=-1, keepdims=True)
    s = logits - m
    lse = jnp.log(jnp.sum(jnp.exp(s), axis=-1, keepdims=True))
    out_ref[...] = (s - lse).astype(out_ref.dtype)


def _round_up(n, m):
    return ((n + m - 1) // m) * m


def rnn_forward(x_bsi, w_i2h, b_i2h, w_i2o, b_i2o, hidden_size):
    """x_bsi: (batch, seq, input) float32.
    w_i2h: (hidden, input+hidden) PyTorch Linear weight; b_i2h: (hidden,)
    w_i2o: (output, input+hidden);                       b_i2o: (output,)
    Returns (batch, output) float32 — log_softmax of the last step's i2o output."""
    batch, seq_len, input_size = x_bsi.shape
    output_size = w_i2o.shape[0]

    b_pad = _round_up(batch, 8)
    i_pad = _round_up(input_size, 128)
    h_pad = _round_up(hidden_size, 128)
    o_pad = _round_up(output_size, 128)

    f32 = jnp.float32
    # Split the i2h / i2o weights into x- and h- halves, transpose to [in, out]
    # layout and zero-pad to hardware tiles (zero padding keeps the math exact).
    w_xh = jnp.zeros((i_pad, h_pad), f32).at[:input_size, :hidden_size].set(
        w_i2h[:, :input_size].T.astype(f32))
    w_hh = jnp.zeros((h_pad, h_pad), f32).at[:hidden_size, :hidden_size].set(
        w_i2h[:, input_size:].T.astype(f32))
    w_xo = jnp.zeros((i_pad, o_pad), f32).at[:input_size, :output_size].set(
        w_i2o[:, :input_size].T.astype(f32))
    w_ho = jnp.zeros((h_pad, o_pad), f32).at[:hidden_size, :output_size].set(
        w_i2o[:, input_size:].T.astype(f32))

    bh = jnp.zeros((1, h_pad), f32).at[0, :hidden_size].set(b_i2h.astype(f32))
    # Large-negative padding makes padded logits irrelevant to the log-softmax.
    bo = jnp.full((1, o_pad), -1e30, f32).at[0, :output_size].set(b_i2o.astype(f32))

    # Time-major, batch padded to a full sublane group, lanes padded to 128,
    # flattened to (seq*b_pad, i_pad) so the in-kernel input projection is one
    # MXU pass over all timesteps.
    x = jnp.transpose(x_bsi.astype(f32), (1, 0, 2))
    x = jnp.pad(x, ((0, 0), (0, b_pad - batch), (0, i_pad - input_size)))
    x2d = x.reshape(seq_len * b_pad, i_pad)

    vmem = lambda: pl.BlockSpec(memory_space=pltpu.MemorySpace.VMEM)
    out = pl.pallas_call(
        rnn_kernel,
        out_shape=jax.ShapeDtypeStruct((b_pad, o_pad), jnp.float32),
        in_specs=[vmem() for _ in range(7)],      # full-array, single-buffered
        out_specs=vmem(),
        scratch_shapes=[pltpu.VMEM((seq_len * b_pad, h_pad), jnp.float32)],
    )(x2d, w_xh, w_hh, bh, w_xo, w_ho, bo)

    return out[:batch, :output_size]


def rnn_reference(x_bsi, w_i2h, b_i2h, w_i2o, b_i2o, hidden_size):
    """Pure-JAX reference mirroring the PyTorch module."""
    batch, seq_len, input_size = x_bsi.shape
    hidden = jnp.zeros((batch, hidden_size), jnp.float32)
    out = None
    for t in range(seq_len):
        xt = x_bsi[:, t, :]
        combined = jnp.concatenate([xt, hidden], axis=-1)
        new_hidden = combined @ w_i2h.T + b_i2h
        logits = combined @ w_i2o.T + b_i2o
        out = jax.nn.log_softmax(logits, axis=-1)
        hidden = new_hidden
    return out


if __name__ == "__main__":
    batch, seq_len = 4, 8
    input_size, hidden_size, output_size = 16, 32, 8

    key = jax.random.PRNGKey(0)
    kx, k1, k2, k3, k4 = jax.random.split(key, 5)

    x = jax.random.normal(kx, (batch, seq_len, input_size), dtype=jnp.float32)

    fan_in = input_size + hidden_size
    bound = 1.0 / (fan_in ** 0.5)
    w_i2h = jax.random.uniform(k1, (hidden_size, fan_in), jnp.float32, -bound, bound)
    b_i2h = jax.random.uniform(k2, (hidden_size,), jnp.float32, -bound, bound)
    w_i2o = jax.random.uniform(k3, (output_size, fan_in), jnp.float32, -bound, bound)
    b_i2o = jax.random.uniform(k4, (output_size,), jnp.float32, -bound, bound)

    out = rnn_forward(x, w_i2h, b_i2h, w_i2o, b_i2o, hidden_size)
    out = jax.block_until_ready(out)

    ref = rnn_reference(x, w_i2h, b_i2h, w_i2o, b_i2o, hidden_size)
    assert out.shape == (batch, output_size)
    assert jnp.allclose(out, ref, atol=1e-4, rtol=1e-4), "mismatch vs reference"

    print("KERNEL_OK")
</pallas_src>

<mosaic_0001>
module attributes {stable_mosaic.version = 11 : i64} {
  func.func @rnn_kernel(%arg0: memref<64x128xf32, #tpu.memory_space<vmem>>, %arg1: memref<128x128xf32, #tpu.memory_space<vmem>>, %arg2: memref<128x128xf32, #tpu.memory_space<vmem>>, %arg3: memref<1x128xf32, #tpu.memory_space<vmem>>, %arg4: memref<128x128xf32, #tpu.memory_space<vmem>>, %arg5: memref<128x128xf32, #tpu.memory_space<vmem>>, %arg6: memref<1x128xf32, #tpu.memory_space<vmem>>, %arg7: memref<8x128xf32, #tpu.memory_space<vmem>>, %arg8: memref<64x128xf32, #tpu.memory_space<vmem>>) attributes {dimension_semantics = [], scalar_prefetch = 0 : i64, scratch_operands = 1 : i64, tpu.core_type = #tpu.core_type<tc>} {
    %c0 = arith.constant 0 : index
    %c0_0 = arith.constant 0 : index
    %0 = vector.load %arg0[%c0, %c0_0] : memref<64x128xf32, #tpu.memory_space<vmem>>, vector<64x128xf32>
    %c0_1 = arith.constant 0 : index
    %c0_2 = arith.constant 0 : index
    %1 = vector.load %arg1[%c0_1, %c0_2] : memref<128x128xf32, #tpu.memory_space<vmem>>, vector<128x128xf32>
    %cst = arith.constant dense<0.000000e+00> : vector<64x128xf32>
    %2 = tpu.matmul %0, %1, %cst {dimension_numbers = #tpu.dot_dimension_numbers<[1], [0], [0], [1], [0, 0, 1, 1], [], []>} : vector<64x128xf32>, vector<128x128xf32>, vector<64x128xf32> -> vector<64x128xf32>
    %c0_3 = arith.constant 0 : index
    %c0_4 = arith.constant 0 : index
    %3 = vector.load %arg3[%c0_3, %c0_4] : memref<1x128xf32, #tpu.memory_space<vmem>>, vector<1x128xf32>
    %4 = vector.broadcast %3 : vector<1x128xf32> to vector<64x128xf32>
    %5 = arith.addf %2, %4 : vector<64x128xf32>
    %c0_5 = arith.constant 0 : index
    %c0_6 = arith.constant 0 : index
    %6 = vector.load %arg8[%c0_5, %c0_6] : memref<64x128xf32, #tpu.memory_space<vmem>>, vector<64x128xf32>
    tpu.vector_store %arg8[%c0_5, %c0_6], %5 {strides = array<i32>} : memref<64x128xf32, #tpu.memory_space<vmem>>, vector<64x128xf32>,
    %c0_7 = arith.constant 0 : index
    %c0_8 = arith.constant 0 : index
    %7 = vector.load %arg8[%c0_7, %c0_8] : memref<64x128xf32, #tpu.memory_space<vmem>>, vector<8x128xf32>
    %c1_i32 = arith.constant 1 : i32
    %c8_i32 = arith.constant 8 : i32
    %8 = arith.muli %c1_i32, %c8_i32 : i32
    %9 = tpu.assume_multiple %8, 8 : i32
    %10 = arith.index_cast %9 : i32 to index
    %c0_9 = arith.constant 0 : index
    %11 = vector.load %arg8[%10, %c0_9] : memref<64x128xf32, #tpu.memory_space<vmem>>, vector<8x128xf32>
    %c0_10 = arith.constant 0 : index
    %c0_11 = arith.constant 0 : index
    %12 = vector.load %arg2[%c0_10, %c0_11] : memref<128x128xf32, #tpu.memory_space<vmem>>, vector<128x128xf32>
    %cst_12 = arith.constant dense<0.000000e+00> : vector<8x128xf32>
    %13 = tpu.matmul %7, %12, %cst_12 {dimension_numbers = #tpu.dot_dimension_numbers<[1], [0], [0], [1], [0, 0, 1, 1], [], []>} : vector<8x128xf32>, vector<128x128xf32>, vector<8x128xf32> -> vector<8x128xf32>
    %14 = arith.addf %11, %13 : vector<8x128xf32>
    %c2_i32 = arith.constant 2 : i32
    %c8_i32_13 = arith.constant 8 : i32
    %15 = arith.muli %c2_i32, %c8_i32_13 : i32
    %16 = tpu.assume_multiple %15, 8 : i32
    %17 = arith.index_cast %16 : i32 to index
    %c0_14 = arith.constant 0 : index
    %18 = vector.load %arg8[%17, %c0_14] : memref<64x128xf32, #tpu.memory_space<vmem>>, vector<8x128xf32>
    %c0_15 = arith.constant 0 : index
    %c0_16 = arith.constant 0 : index
    %19 = vector.load %arg2[%c0_15, %c0_16] : memref<128x128xf32, #tpu.memory_space<vmem>>, vector<128x128xf32>
    %cst_17 = arith.constant dense<0.000000e+00> : vector<8x128xf32>
    %20 = tpu.matmul %14, %19, %cst_17 {dimension_numbers = #tpu.dot_dimension_numbers<[1], [0], [0], [1], [0, 0, 1, 1], [], []>} : vector<8x128xf32>, vector<128x128xf32>, vector<8x128xf32> -> vector<8x128xf32>
    %21 = arith.addf %18, %20 : vector<8x128xf32>
    %c3_i32 = arith.constant 3 : i32
    %c8_i32_18 = arith.constant 8 : i32
    %22 = arith.muli %c3_i32, %c8_i32_18 : i32
    %23 = tpu.assume_multiple %22, 8 : i32
    %24 = arith.index_cast %23 : i32 to index
    %c0_19 = arith.constant 0 : index
    %25 = vector.load %arg8[%24, %c0_19] : memref<64x128xf32, #tpu.memory_space<vmem>>, vector<8x128xf32>
    %c0_20 = arith.constant 0 : index
    %c0_21 = arith.constant 0 : index
    %26 = vector.load %arg2[%c0_20, %c0_21] : memref<128x128xf32, #tpu.memory_space<vmem>>, vector<128x128xf32>
    %cst_22 = arith.constant dense<0.000000e+00> : vector<8x128xf32>
    %27 = tpu.matmul %21, %26, %cst_22 {dimension_numbers = #tpu.dot_dimension_numbers<[1], [0], [0], [1], [0, 0, 1, 1], [], []>} : vector<8x128xf32>, vector<128x128xf32>, vector<8x128xf32> -> vector<8x128xf32>
    %28 = arith.addf %25, %27 : vector<8x128xf32>
    %c4_i32 = arith.constant 4 : i32
    %c8_i32_23 = arith.constant 8 : i32
    %29 = arith.muli %c4_i32, %c8_i32_23 : i32
    %30 = tpu.assume_multiple %29, 8 : i32
    %31 = arith.index_cast %30 : i32 to index
    %c0_24 = arith.constant 0 : index
    %32 = vector.load %arg8[%31, %c0_24] : memref<64x128xf32, #tpu.memory_space<vmem>>, vector<8x128xf32>
    %c0_25 = arith.constant 0 : index
    %c0_26 = arith.constant 0 : index
    %33 = vector.load %arg2[%c0_25, %c0_26] : memref<128x128xf32, #tpu.memory_space<vmem>>, vector<128x128xf32>
    %cst_27 = arith.constant dense<0.000000e+00> : vector<8x128xf32>
    %34 = tpu.matmul %28, %33, %cst_27 {dimension_numbers = #tpu.dot_dimension_numbers<[1], [0], [0], [1], [0, 0, 1, 1], [], []>} : vector<8x128xf32>, vector<128x128xf32>, vector<8x128xf32> -> vector<8x128xf32>
    %35 = arith.addf %32, %34 : vector<8x128xf32>
    %c5_i32 = arith.constant 5 : i32
    %c8_i32_28 = arith.constant 8 : i32
    %36 = arith.muli %c5_i32, %c8_i32_28 : i32
    %37 = tpu.assume_multiple %36, 8 : i32
    %38 = arith.index_cast %37 : i32 to index
    %c0_29 = arith.constant 0 : index
    %39 = vector.load %arg8[%38, %c0_29] : memref<64x128xf32, #tpu.memory_space<vmem>>, vector<8x128xf32>
    %c0_30 = arith.constant 0 : index
    %c0_31 = arith.constant 0 : index
    %40 = vector.load %arg2[%c0_30, %c0_31] : memref<128x128xf32, #tpu.memory_space<vmem>>, vector<128x128xf32>
    %cst_32 = arith.constant dense<0.000000e+00> : vector<8x128xf32>
    %41 = tpu.matmul %35, %40, %cst_32 {dimension_numbers = #tpu.dot_dimension_numbers<[1], [0], [0], [1], [0, 0, 1, 1], [], []>} : vector<8x128xf32>, vector<128x128xf32>, vector<8x128xf32> -> vector<8x128xf32>
    %42 = arith.addf %39, %41 : vector<8x128xf32>
    %c6_i32 = arith.constant 6 : i32
    %c8_i32_33 = arith.constant 8 : i32
    %43 = arith.muli %c6_i32, %c8_i32_33 : i32
    %44 = tpu.assume_multiple %43, 8 : i32
    %45 = arith.index_cast %44 : i32 to index
    %c0_34 = arith.constant 0 : index
    %46 = vector.load %arg8[%45, %c0_34] : memref<64x128xf32, #tpu.memory_space<vmem>>, vector<8x128xf32>
    %c0_35 = arith.constant 0 : index
    %c0_36 = arith.constant 0 : index
    %47 = vector.load %arg2[%c0_35, %c0_36] : memref<128x128xf32, #tpu.memory_space<vmem>>, vector<128x128xf32>
    %cst_37 = arith.constant dense<0.000000e+00> : vector<8x128xf32>
    %48 = tpu.matmul %42, %47, %cst_37 {dimension_numbers = #tpu.dot_dimension_numbers<[1], [0], [0], [1], [0, 0, 1, 1], [], []>} : vector<8x128xf32>, vector<128x128xf32>, vector<8x128xf32> -> vector<8x128xf32>
    %49 = arith.addf %46, %48 : vector<8x128xf32>
    %c6_i32_38 = arith.constant 6 : i32
    %c56 = arith.constant 56 : index
    %c0_39 = arith.constant 0 : index
    %50 = vector.load %arg0[%c56, %c0_39] : memref<64x128xf32, #tpu.memory_space<vmem>>, vector<8x128xf32>
    %c0_40 = arith.constant 0 : index
    %c0_41 = arith.constant 0 : index
    %51 = vector.load %arg4[%c0_40, %c0_41] : memref<128x128xf32, #tpu.memory_space<vmem>>, vector<128x128xf32>
    %cst_42 = arith.constant dense<0.000000e+00> : vector<8x128xf32>
    %52 = tpu.matmul %50, %51, %cst_42 {dimension_numbers = #tpu.dot_dimension_numbers<[1], [0], [0], [1], [0, 0, 1, 1], [], []>} : vector<8x128xf32>, vector<128x128xf32>, vector<8x128xf32> -> vector<8x128xf32>
    %c0_43 = arith.constant 0 : index
    %c0_44 = arith.constant 0 : index
    %53 = vector.load %arg5[%c0_43, %c0_44] : memref<128x128xf32, #tpu.memory_space<vmem>>, vector<128x128xf32>
    %cst_45 = arith.constant dense<0.000000e+00> : vector<8x128xf32>
    %54 = tpu.matmul %49, %53, %cst_45 {dimension_numbers = #tpu.dot_dimension_numbers<[1], [0], [0], [1], [0, 0, 1, 1], [], []>} : vector<8x128xf32>, vector<128x128xf32>, vector<8x128xf32> -> vector<8x128xf32>
    %55 = arith.addf %52, %54 : vector<8x128xf32>
    %c0_46 = arith.constant 0 : index
    %c0_47 = arith.constant 0 : index
    %56 = vector.load %arg6[%c0_46, %c0_47] : memref<1x128xf32, #tpu.memory_space<vmem>>, vector<1x128xf32>
    %57 = vector.broadcast %56 : vector<1x128xf32> to vector<8x128xf32>
    %58 = arith.addf %55, %57 : vector<8x128xf32>
    %cst_48 = arith.constant dense<0xFF800000> : vector<8xf32>
    %59 = vector.multi_reduction <maximumf>, %58, %cst_48 [1] : vector<8x128xf32> to vector<8xf32>
    %60 = vector.shape_cast %59 : vector<8xf32> to vector<8x1xf32>
    %61 = vector.broadcast %60 : vector<8x1xf32> to vector<8x128xf32>
    %62 = arith.subf %58, %61 : vector<8x128xf32>
    %63 = math.exp %62 : vector<8x128xf32>
    %cst_49 = arith.constant dense<0.000000e+00> : vector<8xf32>
    %64 = vector.multi_reduction <add>, %63, %cst_49 [1] : vector<8x128xf32> to vector<8xf32>
    %65 = vector.shape_cast %64 : vector<8xf32> to vector<8x1xf32>
    %66 = math.log %65 : vector<8x1xf32>
    %67 = vector.broadcast %66 : vector<8x1xf32> to vector<8x128xf32>
    %68 = arith.subf %62, %67 : vector<8x128xf32>
    %c0_50 = arith.constant 0 : index
    %c0_51 = arith.constant 0 : index
    %69 = vector.load %arg7[%c0_50, %c0_51] : memref<8x128xf32, #tpu.memory_space<vmem>>, vector<8x128xf32>
    tpu.vector_store %arg7[%c0_50, %c0_51], %68 {strides = array<i32>} : memref<8x128xf32, #tpu.memory_space<vmem>>, vector<8x128xf32>,
    return
  }
}

</mosaic_0001>

<bundles_post_ra>
// kernel: tpu_custom_call.1
= control target key start
LH: loop header
LB: loop body
LE: loop exit
PB: predicated region body
PF: predicated region fallthrough
CT: control target
= control target key end

     0   :  { %12 = vsyncpa [#allocation4], 0  ;;  %s2092_s0 = inlined_call_operand.hbm [shape: f32[64,128], index: 0, kind: input, shape index: {}]   ;;  %s2093_s1 = inlined_call_operand.hbm [shape: f32[128,128], index: 1, kind: input, shape index: {}]   ;;  %s2094_s2 = inlined_call_operand.hbm [shape: f32[128,128], index: 2, kind: input, shape index: {}]   ;;  %s2095_s3 = inlined_call_operand.vmem [shape: f32[1,128], index: 3, kind: input, shape index: {}]   ;;  %s2096_s4 = inlined_call_operand.hbm [shape: f32[128,128], index: 4, kind: input, shape index: {}]   ;;  %s2097_s5 = inlined_call_operand.hbm [shape: f32[128,128], index: 5, kind: input, shape index: {}]   ;;  %s2098_s6 = inlined_call_operand.vmem [shape: f32[1,128], index: 6, kind: input, shape index: {}]   ;;  %s2099_s7 = inlined_call_operand.hbm [shape: f32[8,128], index: 7, kind: output, shape index: {}]  }
   0x1   :  { %13 = vsyncpa [#allocation7], 0 }
   0x2   :  { %14 = vsyncpa [#allocation10], 0 }
   0x3   :  { %15 = vsyncpa [#allocation5], 0  ;;  %s1768_s24 = smov [#allocation6]   ;;  %s1769_s26 = smov [#allocation9]  }
   0x4   :  { %s33_s25 = sshll.u32 %s1768_s24, 4  ;;  %s59_s27 = sshll.u32 %s1769_s26, 4  ;;  %s34_s25 = int_to_ptr.vmem [resolvable:$true] %s33_s25  ;;  %s1819_s27 = int_to_ptr.vmem [resolvable:$true] %s59_s27 }
   0x5   :  { %s1628_s30 = scalar_lea.hbm %s2093_s1, 2048 }
   0x6   :  { %p1629_p0 = scmp.ne.s32.totalorder %s2093_s1, %s1628_s30  ;;  %p1632_p1 = scmp.lt.u32.totalorder %s1628_s30, %s2093_s1 }
   0x8   :  { %p1634_p2 = pnand %p1632_p1, %p1629_p0 }
   0xa   :  { %1637 = shalt.err (!%p1634_p2)
}
   0xb   :  { %s1638_s12 = scalar_lea.vmem %s34_s25, 2048  ;;  %p1643_p4 = scmp.lt.s32.totalorder %s34_s25, %s34_s25 }
   0xc   :  { %p1639_p3 = scmp.ne.s32.totalorder %s34_s25, %s1638_s12  ;;  %p1644_p5 = scmp.lt.s32.totalorder %s1638_s12, %s1638_s12 }
   0xe   :  { %p1645_p6 = por %p1644_p5, %p1643_p4 }
  0x10   :  { %p1646_p7 = pnand %p1645_p6, %p1639_p3 }
  0x12   :  { %1649 = shalt.err (!%p1646_p7)
}
  0x13   :  { %s1770_s13 = smov 128   ;;  %s1771_s14 = smov 8  }
  0x14   :  { %39 = dma.hbm_to_vmem [thread:$0]  %s2093_s1, 2048, %s34_s25, [#allocation7], %s1770_s13, %s1770_s13, %s1771_s14  }
  0x15   :  { %s1650_s19 = scalar_lea.hbm %s2096_s4, 2048 }
  0x16   :  { %p1651_p8 = scmp.ne.s32.totalorder %s2096_s4, %s1650_s19  ;;  %p1654_p9 = scmp.lt.u32.totalorder %s1650_s19, %s2096_s4 }
  0x18   :  { %p1656_p10 = pnand %p1654_p9, %p1651_p8 }
  0x1a   :  { %1659 = shalt.err (!%p1656_p10)
}
  0x1b   :  { %s1660_s24 = scalar_lea.vmem %s1819_s27, 2048  ;;  %p1665_p12 = scmp.lt.s32.totalorder %s1819_s27, %s1819_s27 }
  0x1c   :  { %p1661_p11 = scmp.ne.s32.totalorder %s1819_s27, %s1660_s24  ;;  %p1666_p13 = scmp.lt.s32.totalorder %s1660_s24, %s1660_s24 }
  0x1e   :  { %p1667_p0 = por %p1666_p13, %p1665_p12 }
  0x20   :  { %p1668_p1 = pnand %p1667_p0, %p1661_p11 }
  0x22   :  { %1671 = shalt.err (!%p1668_p1)
}
  0x23   :  { %65 = dma.hbm_to_vmem [thread:$0]  %s2096_s4, 2048, %s1819_s27, [#allocation10], %s1770_s13, %s1770_s13, %s1771_s14  }
  0x24   :  { %s1772_s26 = smov [#allocation3]   ;;  %s1773_s29 = smov [#allocation8]  }
  0x25   :  { %s21_s28 = sshll.u32 %s1772_s26, 4  ;;  %s45_s30 = sshll.u32 %s1773_s29, 4  ;;  %s22_s28 = int_to_ptr.vmem [resolvable:$true] %s21_s28  ;;  %s1856_s30 = int_to_ptr.vmem [resolvable:$true] %s45_s30 }
  0x26   :  { %s1672_s10 = scalar_lea.hbm %s2092_s0, 1024 }
  0x27   :  { %p1673_p2 = scmp.ne.s32.totalorder %s2092_s0, %s1672_s10  ;;  %p1676_p3 = scmp.lt.u32.totalorder %s1672_s10, %s2092_s0 }
  0x29   :  { %p1678_p4 = pnand %p1676_p3, %p1673_p2 }
  0x2b   :  { %1681 = shalt.err (!%p1678_p4)
}
  0x2c   :  { %s1682_s4 = scalar_lea.vmem %s22_s28, 1024  ;;  %p1687_p6 = scmp.lt.s32.totalorder %s22_s28, %s22_s28 }
  0x2d   :  { %p1683_p5 = scmp.ne.s32.totalorder %s22_s28, %s1682_s4  ;;  %p1688_p7 = scmp.lt.s32.totalorder %s1682_s4, %s1682_s4 }
  0x2f   :  { %p1689_p8 = por %p1688_p7, %p1687_p6 }
  0x31   :  { %p1690_p9 = pnand %p1689_p8, %p1683_p5 }
  0x33   :  { %1693 = shalt.err (!%p1690_p9)
}
  0x34   :  { %27 = dma.hbm_to_vmem [thread:$0]  %s2092_s0, 1024, %s22_s28, [#allocation4], %s1770_s13, %s1770_s13, %s1771_s14  }
  0x35   :  { %s1694_s20 = scalar_lea.hbm %s2094_s2, 2048 }
  0x36   :  { %p1695_p10 = scmp.ne.s32.totalorder %s2094_s2, %s1694_s20  ;;  %p1698_p11 = scmp.lt.u32.totalorder %s1694_s20, %s2094_s2 }
  0x38   :  { %p1700_p12 = pnand %p1698_p11, %p1695_p10 }
  0x3a   :  { %1703 = shalt.err (!%p1700_p12)
}
  0x3b   :  { %s1704_s1 = scalar_lea.vmem %s1856_s30, 2048  ;;  %p1709_p0 = scmp.lt.s32.totalorder %s1856_s30, %s1856_s30 }
  0x3c   :  { %p1705_p13 = scmp.ne.s32.totalorder %s1856_s30, %s1704_s1  ;;  %p1710_p1 = scmp.lt.s32.totalorder %s1704_s1, %s1704_s1 }
  0x3e   :  { %p1711_p2 = por %p1710_p1, %p1709_p0 }
  0x40   :  { %p1712_p3 = pnand %p1711_p2, %p1705_p13 }
  0x42   :  { %1715 = shalt.err (!%p1712_p3)
}
  0x43   :  { %51 = dma.hbm_to_vmem [thread:$0]  %s2094_s2, 2048, %s1856_s30, [#allocation7], %s1770_s13, %s1770_s13, %s1771_s14  }
  0x44   :  { %s1774_s26 = smov [#allocation11]   ;;  %s1716_s9 = scalar_lea.hbm %s2097_s5, 2048 }
  0x45   :  { %s71_s28 = sshll.u32 %s1774_s26, 4  ;;  %p1717_p4 = scmp.ne.s32.totalorder %s2097_s5, %s1716_s9  ;;  %s72_s28 = int_to_ptr.vmem [resolvable:$true] %s71_s28 }
  0x46   :  { %p1720_p5 = scmp.lt.u32.totalorder %s1716_s9, %s2097_s5 }
  0x48   :  { %p1722_p6 = pnand %p1720_p5, %p1717_p4 }
  0x4a   :  { %1725 = shalt.err (!%p1722_p6)
}
  0x4b   :  { %s1726_s16 = scalar_lea.vmem %s72_s28, 2048  ;;  %p1731_p8 = scmp.lt.s32.totalorder %s72_s28, %s72_s28 }
  0x4c   :  { %p1727_p7 = scmp.ne.s32.totalorder %s72_s28, %s1726_s16  ;;  %p1732_p9 = scmp.lt.s32.totalorder %s1726_s16, %s1726_s16 }
  0x4e   :  { %p1733_p10 = por %p1732_p9, %p1731_p8 }
  0x50   :  { %p1734_p11 = pnand %p1733_p10, %p1727_p7 }
  0x52   :  { %1737 = shalt.err (!%p1734_p11)
}
  0x53   :  { %77 = dma.hbm_to_vmem [thread:$0]  %s2097_s5, 2048, %s72_s28, [#allocation10], %s1770_s13, %s1770_s13, %s1771_s14  }
  0x54   :  { %1760 = dma.done.wait [#allocation4], 1024  }
  0x55   :  { %1761 = vsyncadd [#allocation4], 4294966272 }
  0x56   :  { %1762 = dma.done.wait [#allocation7], 4096  }
  0x57   :  { %1763 = vsyncadd [#allocation7], 4294963200 }
  0x58   :  { %1764 = dma.done.wait [#allocation10], 4096  }
  0x59   :  { %1765 = vsyncadd [#allocation10], 4294963200  ;;  %v1775_v0 = vmov 0.0|0.0   ;;  %v103_v1 = vld [vmem:[#allocation6] sm:$0xff]  ;;  %v104_v2 = vld [vmem:[#allocation6 + $0x8] sm:$0xff]  ;;  %vm1776_vm0 = vmmov 0  }
  0x5a   :  { %1421 = vmatprep.subr.bf16.mxu1 %v1775_v0  ;;  %v105_v3 = vld [vmem:[#allocation6 + $0x10] sm:$0xff]  ;;  %v1389_v4 = vpack.c.bf16 %v104_v2, %v103_v1  ;;  %v106_v5 = vld [vmem:[#allocation6 + $0x18] sm:$0xff]  ;;  %v107_v7 = vld [vmem:[#allocation6 + $0x20] sm:$0xff]  ;;  %v1777_v51 = vmov 0.0   ;;  %s1778_s4 = smov [#allocation12]  }
  0x5b   :  { %v1393_v6 = vpack.c.bf16 %v106_v5, %v105_v3  ;;  %v108_v8 = vld [vmem:[#allocation6 + $0x28] sm:$0xff]  ;;  %v109_v10 = vld [vmem:[#allocation6 + $0x30] sm:$0xff]  ;;  %v110_v11 = vld [vmem:[#allocation6 + $0x38] sm:$0xff]  ;;  %1141 = vmatprep.mubr.msk.f32.mxu1 %vm1776_vm0, %v1777_v51  ;;  %s892_s27 = sshll.u32 %s1778_s4, 4  ;;  %s893_s27 = int_to_ptr.vmem [resolvable:$true] %s892_s27 }
  0x5c   :  { %1390 = vmatprep.subr.bf16.mxu0 %v1389_v4  ;;  %v1397_v9 = vpack.c.bf16 %v108_v8, %v107_v7  ;;  %v95_v12 = vld [vmem:[#allocation3] sm:$0xff]  ;;  %v243_v14 = vld [vmem:[#allocation8 + $0x8] sm:$0xff]  ;;  %v244_v15 = vld [vmem:[#allocation8 + $0x10] sm:$0xff]  ;;  %v1401_v18 = vpack.c.bf16 %v110_v11, %v109_v10  ;;  %p1743_p13 = scmp.lt.s32.totalorder %s893_s27, %s893_s27 }
  0x5d   :  { %1392 = vmatpush3.bf16.msra.mxu0 %v1389_v4  ;;  %1097 = vmatprep.mubr.f32.mxu0 %v95_v12  ;;  %v242_v13 = vld [vmem:[#allocation8] sm:$0xff]  ;;  %v245_v17 = vld [vmem:[#allocation8 + $0x18] sm:$0xff]  ;;  %v112_v21 = vld [vmem:[#allocation6 + $0x48] sm:$0xff] }
  0x5e   :  { %1394 = vmatprep.subr.bf16.mxu0 %v1393_v6  ;;  %v1909_v16 = vpack.c.bf16 %v243_v14, %v242_v13  ;;  %v111_v19 = vld [vmem:[#allocation6 + $0x40] sm:$0xff]  ;;  %v1912_v20 = vpack.c.bf16 %v245_v17, %v244_v15  ;;  %v247_v23 = vld [vmem:[#allocation8 + $0x28] sm:$0xff]  ;;  %v113_v25 = vld [vmem:[#allocation6 + $0x50] sm:$0xff] }
  0x5f   :  { %v246_v22 = vld [vmem:[#allocation8 + $0x20] sm:$0xff]  ;;  %v1405_v24 = vpack.c.bf16 %v112_v21, %v111_v19  ;;  %v114_v27 = vld [vmem:[#allocation6 + $0x58] sm:$0xff]  ;;  %v248_v28 = vld [vmem:[#allocation8 + $0x30] sm:$0xff] }
  0x60   :  { %1423 = vmatpush3.bf16.msra.mxu1 %v1909_v16  ;;  %v1916_v26 = vpack.c.bf16 %v247_v23, %v246_v22  ;;  %v249_v29 = vld [vmem:[#allocation8 + $0x38] sm:$0xff]  ;;  %v1409_v30 = vpack.c.bf16 %v114_v27, %v113_v25  ;;  %v115_v31 = vld [vmem:[#allocation6 + $0x60] sm:$0xff]  ;;  %v116_v33 = vld [vmem:[#allocation6 + $0x68] sm:$0xff] }
  0x61   :  { %1396 = vmatpush3.bf16.msra.mxu0 %v1393_v6  ;;  %1424 = vmatprep.subr.bf16.mxu1 %v1775_v0  ;;  %v1920_v32 = vpack.c.bf16 %v249_v29, %v248_v28  ;;  %v250_v34 = vld [vmem:[#allocation8 + $0x40] sm:$0xff]  ;;  %v251_v35 = vld [vmem:[#allocation8 + $0x48] sm:$0xff]  ;;  %v1413_v36 = vpack.c.bf16 %v116_v33, %v115_v31  ;;  %v117_v37 = vld [vmem:[#allocation6 + $0x70] sm:$0xff] }
  0x62   :  { %1398 = vmatprep.subr.bf16.mxu0 %v1397_v9  ;;  %v1924_v38 = vpack.c.bf16 %v251_v35, %v250_v34  ;;  %v118_v39 = vld [vmem:[#allocation6 + $0x78] sm:$0xff]  ;;  %v252_v40 = vld [vmem:[#allocation8 + $0x50] sm:$0xff]  ;;  %v254_v44 = vld [vmem:[#allocation8 + $0x60] sm:$0xff] }
  0x63   :  { %v253_v41 = vld [vmem:[#allocation8 + $0x58] sm:$0xff]  ;;  %v1417_v42 = vpack.c.bf16 %v118_v39, %v117_v37  ;;  %v255_v45 = vld [vmem:[#allocation8 + $0x68] sm:$0xff]  ;;  %v256_v48 = vld [vmem:[#allocation8 + $0x70] sm:$0xff] }
  0x64   :  { %1426 = vmatpush3.bf16.msra.mxu1 %v1912_v20  ;;  %v1928_v43 = vpack.c.bf16 %v253_v41, %v252_v40  ;;  %v1932_v46 = vpack.c.bf16 %v255_v45, %v254_v44  ;;  %v96_v47 = vld [vmem:[#allocation3 + $0x8] sm:$0xff]  ;;  %v257_v49 = vld [vmem:[#allocation8 + $0x78] sm:$0xff]  ;;  %v97_v52 = vld [vmem:[#allocation3 + $0x10] sm:$0xff] }
  0x65   :  { %1400 = vmatpush3.bf16.msra.mxu0 %v1397_v9  ;;  %1427 = vmatprep.subr.bf16.mxu1 %v1775_v0  ;;  %v1952_v50 = vpack.c.bf16 %v257_v49, %v256_v48  ;;  %v98_v53 = vld [vmem:[#allocation3 + $0x18] sm:$0xff]  ;;  %v99_v54 = vld [vmem:[#allocation3 + $0x20] sm:$0xff]  ;;  %v100_v55 = vld [vmem:[#allocation3 + $0x28] sm:$0xff] }
  0x66   :  { %1402 = vmatprep.subr.bf16.mxu0 %v1401_v18  ;;  %v101_v56 = vld [vmem:[#allocation3 + $0x30] sm:$0xff]  ;;  %v1960_v57 = vld [vmem:[#allocation3 + $0x38] sm:$0xff]  ;;  %v1968_v58 = vld [vmem:[%s2095_s3] ss:$0 sm:$0xff] }
  0x67   :  { %v711_v21 = vld [vmem:[#allocation11] sm:$0xff]  ;;  %v712_v22 = vld [vmem:[#allocation11 + $0x8] sm:$0xff]  ;;  %v714_v25 = vld [vmem:[#allocation11 + $0x18] sm:$0xff] }
  0x68   :  { %1429 = vmatpush3.bf16.msra.mxu1 %v1916_v26  ;;  %v1566_v23 = vpack.c.bf16 %v712_v22, %v711_v21  ;;  %v715_v27 = vld [vmem:[#allocation11 + $0x20] sm:$0xff]  ;;  %v716_v28 = vld [vmem:[#allocation11 + $0x28] sm:$0xff]  ;;  %v718_v31 = vld [vmem:[#allocation11 + $0x38] sm:$0xff] }
  0x69   :  { %1404 = vmatpush3.bf16.msra.mxu0 %v1401_v18  ;;  %1430 = vmatprep.subr.bf16.mxu1 %v1775_v0  ;;  %v1572_v29 = vpack.c.bf16 %v716_v28, %v715_v27  ;;  %v719_v33 = vld [vmem:[#allocation11 + $0x40] sm:$0xff]  ;;  %v720_v34 = vld [vmem:[#allocation11 + $0x48] sm:$0xff]  ;;  %v722_v37 = vld [vmem:[#allocation11 + $0x58] sm:$0xff] }
  0x6a   :  { %1406 = vmatprep.subr.bf16.mxu0 %v1405_v24  ;;  %v1578_v35 = vpack.c.bf16 %v720_v34, %v719_v33  ;;  %v723_v39 = vld [vmem:[#allocation11 + $0x60] sm:$0xff]  ;;  %v724_v40 = vld [vmem:[#allocation11 + $0x68] sm:$0xff]  ;;  %v697_v49 = vld [vmem:[#allocation9 + $0x10] sm:$0xff] }
  0x6b   :  { %v1584_v41 = vpack.c.bf16 %v724_v40, %v723_v39 }
  0x6c   :  { %1432 = vmatpush3.bf16.msra.mxu1 %v1920_v32 }
  0x6d   :  { %1408 = vmatpush3.bf16.msra.mxu0 %v1405_v24  ;;  %1433 = vmatprep.subr.bf16.mxu1 %v1775_v0  ;;  %v713_v24 = vld [vmem:[#allocation11 + $0x10] sm:$0xff] }
  0x6e   :  { %1410 = vmatprep.subr.bf16.mxu0 %v1409_v30 }
  0x70   :  { %1435 = vmatpush3.bf16.msra.mxu1 %v1924_v38 }
  0x71   :  { %1412 = vmatpush3.bf16.msra.mxu0 %v1409_v30  ;;  %1436 = vmatprep.subr.bf16.mxu1 %v1775_v0  ;;  %v717_v30 = vld [vmem:[#allocation11 + $0x30] sm:$0xff] }
  0x72   :  { %1414 = vmatprep.subr.bf16.mxu0 %v1413_v36 }
  0x74   :  { %1438 = vmatpush3.bf16.msra.mxu1 %v1928_v43 }
  0x75   :  { %1416 = vmatpush3.bf16.msra.mxu0 %v1413_v36  ;;  %1439 = vmatprep.subr.bf16.mxu1 %v1775_v0  ;;  %v721_v36 = vld [vmem:[#allocation11 + $0x50] sm:$0xff] }
  0x76   :  { %1418 = vmatprep.subr.bf16.mxu0 %v1417_v42 }
  0x78   :  { %1441 = vmatpush3.bf16.msra.mxu1 %v1932_v46 }
  0x79   :  { %1420 = vmatpush3.bf16.msra.mxu0 %v1417_v42  ;;  %1442 = vmatprep.subr.bf16.mxu1 %v1775_v0  ;;  %v695_v42 = vld [vmem:[#allocation9] sm:$0xff] }
  0x7a   :  { %1445 = vmatprep.subr.bf16.mxu0 %v1775_v0 }
  0x7c   :  { %1098 = vmatmul.mubr.f32.vlgmr.msra.gmra.mrb[0].mxu0 %v96_v47  ;;  %1444 = vmatpush3.bf16.msra.mxu1 %v1952_v50 }
  0x7d   :  { %1447 = vmatpush3.bf16.msra.mxu0 %v1909_v16  ;;  %1469 = vmatprep.subr.bf16.mxu1 %v1775_v0 }
  0x7e   :  { %1448 = vmatprep.subr.bf16.mxu0 %v1775_v0  ;;  %1100 = vmatprep.mubr.f32.mxu0 %v97_v52 }
  0x80   :  { %1101 = vmatmul.mubr.f32.gmra.mrb[2].mxu0 %v98_v53  ;;  %v699_v53 = vld [vmem:[#allocation9 + $0x20] sm:$0xff] }
  0x81   :  { %1450 = vmatpush3.bf16.msra.mxu0 %v1912_v20  ;;  %1103 = vmatprep.mubr.f32.mxu0 %v99_v54  ;;  %v700_v54 = vld [vmem:[#allocation9 + $0x28] sm:$0xff] }
  0x82   :  { %1451 = vmatprep.subr.bf16.mxu0 %v1775_v0 }
  0x84   :  { %1104 = vmatmul.mubr.f32.gmra.mrb[4].mxu0 %v100_v55  ;;  %v1596_v55 = vpack.c.bf16 %v700_v54, %v699_v53 }
  0x85   :  { %1453 = vmatpush3.bf16.msra.mxu0 %v1916_v26  ;;  %1106 = vmatprep.mubr.f32.mxu0 %v101_v56  ;;  %v701_v56 = vld [vmem:[#allocation9 + $0x30] sm:$0xff] }
  0x86   :  { %1454 = vmatprep.subr.bf16.mxu0 %v1775_v0 }
  0x88   :  { %1107 = vmatmul.mubr.f32.gmra.mrb[6].mxu0 %v1960_v57 }
  0x89   :  { %1456 = vmatpush3.bf16.msra.mxu0 %v1920_v32  ;;  %1176 = vmatprep.mubr.msk.f32.mxu0 %vm1776_vm0, %v1777_v51 }
  0x8a   :  { %1457 = vmatprep.subr.bf16.mxu0 %v1775_v0 }
  0x8d   :  { %1459 = vmatpush3.bf16.msra.mxu0 %v1924_v38 }
  0x8e   :  { %1460 = vmatprep.subr.bf16.mxu0 %v1775_v0 }
  0x91   :  { %1462 = vmatpush3.bf16.msra.mxu0 %v1928_v43 }
  0x92   :  { %1463 = vmatprep.subr.bf16.mxu0 %v1775_v0 }
  0x95   :  { %1465 = vmatpush3.bf16.msra.mxu0 %v1932_v46 }
  0x96   :  { %1466 = vmatprep.subr.bf16.mxu0 %v1775_v0 }
  0x99   :  { %1468 = vmatpush3.bf16.msra.mxu0 %v1952_v50 }
  0x9a   :  { %1493 = vmatprep.subr.bf16.mxu0 %v1775_v0 }
 0x14f   :  { %v1099_v59 = vpop.f32.mrb[0].mxu0 }
 0x150   :  { %v192_v60 = vpop.f32.mrb[1].mxu0  ;;  %v198_v5 = vadd.f32 %v1099_v59, %v1968_v58  ;;  %v702_v59 = vld [vmem:[#allocation9 + $0x38] sm:$0xff] }
 0x151   :  { %v193_v61 = vadd.f32 %v1968_v58, %v192_v60  ;;  %v1599_v60 = vpack.c.bf16 %v702_v59, %v701_v56 }
 0x153   :  { %1142 = vmatmul.mubr.f32.vlgmr.msra.gmra.mrb[0].mxu1 %v193_v61  ;;  %v1102_v62 = vpop.f32.mrb[2].mxu0  ;;  %v703_v61 = vld [vmem:[#allocation9 + $0x40] sm:$0xff] }
 0x154   :  { %1471 = vmatpush3.bf16.msra.mxu1 %v1909_v16  ;;  %1211 = vmatprep.mubr.msk.f32.mxu1 %vm1776_vm0, %v1777_v51  ;;  %v202_v63 = vpop.f32.mrb[3].mxu0  ;;  %v208_v13 = vadd.f32 %v1102_v62, %v1968_v58  ;;  %v704_v62 = vld [vmem:[#allocation9 + $0x48] sm:$0xff] }
 0x155   :  { %1472 = vmatprep.subr.bf16.mxu1 %v1775_v0  ;;  %v203_v9 = vadd.f32 %v1968_v58, %v202_v63  ;;  %v1602_v63 = vpack.c.bf16 %v704_v62, %v703_v61 }
 0x157   :  { %v1989_v1 = vpop.f32.mrb[4].mxu0 }
 0x158   :  { %1474 = vmatpush3.bf16.msra.mxu1 %v1912_v20  ;;  %v1991_v2 = vpop.f32.mrb[5].mxu0  ;;  %v218_v44 = vadd.f32 %v1989_v1, %v1968_v58  ;;  %v706_v1 = vld [vmem:[#allocation9 + $0x58] sm:$0xff] }
 0x159   :  { %1475 = vmatprep.subr.bf16.mxu1 %v1775_v0 }
 0x15b   :  { %v1108_v3 = vpop.f32.mrb[6].mxu0 }
 0x15c   :  { %1477 = vmatpush3.bf16.msra.mxu1 %v1916_v26  ;;  %v1993_v4 = vpop.f32.mrb[7].mxu0  ;;  %v707_v3 = vld [vmem:[#allocation9 + $0x60] sm:$0xff] }
 0x15d   :  { %1478 = vmatprep.subr.bf16.mxu1 %v1775_v0 }
 0x160   :  { %1480 = vmatpush3.bf16.msra.mxu1 %v1920_v32 }
 0x161   :  { %1481 = vmatprep.subr.bf16.mxu1 %v1775_v0 }
 0x164   :  { %1483 = vmatpush3.bf16.msra.mxu1 %v1924_v38 }
 0x165   :  { %1484 = vmatprep.subr.bf16.mxu1 %v1775_v0 }
 0x168   :  { %1486 = vmatpush3.bf16.msra.mxu1 %v1928_v43 }
 0x169   :  { %1487 = vmatprep.subr.bf16.mxu1 %v1775_v0 }
 0x16c   :  { %1489 = vmatpush3.bf16.msra.mxu1 %v1932_v46 }
 0x16d   :  { %1490 = vmatprep.subr.bf16.mxu1 %v1775_v0 }
 0x170   :  { %1492 = vmatpush3.bf16.msra.mxu1 %v1952_v50 }
 0x171   :  { %1517 = vmatprep.subr.bf16.mxu1 %v1775_v0 }
 0x226   :  { %v324_v6 = vpop.f32.mrb[0].mxu1 }
 0x227   :  { %v328_v7 = vadd.f32 %v324_v6, %v198_v5  ;;  %v1143_v8 = vpop.f32.mrb[1].mxu1  ;;  %v708_v5 = vld [vmem:[#allocation9 + $0x68] sm:$0xff] }
 0x228   :  { %v1608_v6 = vpack.c.bf16 %v708_v5, %v707_v3  ;;  %v710_v8 = vld [vmem:[#allocation9 + $0x78] sm:$0xff] }
 0x229   :  { %1177 = vmatmul.mubr.f32.vlgmr.msra.gmra.mrb[8].mxu0 %v328_v7  ;;  %v709_v7 = vld [vmem:[#allocation9 + $0x70] sm:$0xff] }
 0x22a   :  { %1495 = vmatpush3.bf16.msra.mxu0 %v1909_v16  ;;  %1246 = vmatprep.mubr.msk.f32.mxu0 %vm1776_vm0, %v1777_v51 }
 0x22b   :  { %1496 = vmatprep.subr.bf16.mxu0 %v1775_v0 }
 0x22e   :  { %1498 = vmatpush3.bf16.msra.mxu0 %v1912_v20 }
 0x22f   :  { %1499 = vmatprep.subr.bf16.mxu0 %v1775_v0 }
 0x232   :  { %1501 = vmatpush3.bf16.msra.mxu0 %v1916_v26 }
 0x233   :  { %1502 = vmatprep.subr.bf16.mxu0 %v1775_v0 }
 0x236   :  { %1504 = vmatpush3.bf16.msra.mxu0 %v1920_v32 }
 0x237   :  { %1505 = vmatprep.subr.bf16.mxu0 %v1775_v0 }
 0x23a   :  { %1507 = vmatpush3.bf16.msra.mxu0 %v1924_v38 }
 0x23b   :  { %1508 = vmatprep.subr.bf16.mxu0 %v1775_v0 }
 0x23e   :  { %1510 = vmatpush3.bf16.msra.mxu0 %v1928_v43 }
 0x23f   :  { %1511 = vmatprep.subr.bf16.mxu0 %v1775_v0 }
 0x242   :  { %1513 = vmatpush3.bf16.msra.mxu0 %v1932_v46 }
 0x243   :  { %1514 = vmatprep.subr.bf16.mxu0 %v1775_v0 }
 0x246   :  { %1516 = vmatpush3.bf16.msra.mxu0 %v1952_v50 }
 0x247   :  { %1541 = vmatprep.subr.bf16.mxu0 %v1775_v0 }
 0x2fc   :  { %v397_v10 = vpop.f32.mrb[8].mxu0 }
 0x2fd   :  { %v401_v11 = vadd.f32 %v397_v10, %v203_v9  ;;  %v1178_v12 = vpop.f32.mrb[9].mxu0  ;;  %v1611_v9 = vpack.c.bf16 %v710_v8, %v709_v7  ;;  %v725_v10 = vld [vmem:[#allocation11 + $0x70] sm:$0xff] }
 0x2ff   :  { %1212 = vmatmul.mubr.f32.vlgmr.msra.gmra.mrb[2].mxu1 %v401_v11  ;;  %v726_v11 = vld [vmem:[#allocation11 + $0x78] sm:$0xff] }
 0x300   :  { %1519 = vmatpush3.bf16.msra.mxu1 %v1909_v16  ;;  %1281 = vmatprep.mubr.msk.f32.mxu1 %vm1776_vm0, %v1777_v51  ;;  %v1587_v12 = vpack.c.bf16 %v726_v11, %v725_v10 }
 0x301   :  { %1520 = vmatprep.subr.bf16.mxu1 %v1775_v0 }
 0x304   :  { %1522 = vmatpush3.bf16.msra.mxu1 %v1912_v20 }
 0x305   :  { %1523 = vmatprep.subr.bf16.mxu1 %v1775_v0 }
 0x308   :  { %1525 = vmatpush3.bf16.msra.mxu1 %v1916_v26 }
 0x309   :  { %1526 = vmatprep.subr.bf16.mxu1 %v1775_v0 }
 0x30c   :  { %1528 = vmatpush3.bf16.msra.mxu1 %v1920_v32 }
 0x30d   :  { %1529 = vmatprep.subr.bf16.mxu1 %v1775_v0 }
 0x310   :  { %1531 = vmatpush3.bf16.msra.mxu1 %v1924_v38 }
 0x311   :  { %1532 = vmatprep.subr.bf16.mxu1 %v1775_v0 }
 0x314   :  { %1534 = vmatpush3.bf16.msra.mxu1 %v1928_v43 }
 0x315   :  { %1535 = vmatprep.subr.bf16.mxu1 %v1775_v0 }
 0x318   :  { %1537 = vmatpush3.bf16.msra.mxu1 %v1932_v46 }
 0x319   :  { %1538 = vmatprep.subr.bf16.mxu1 %v1775_v0 }
 0x31c   :  { %1540 = vmatpush3.bf16.msra.mxu1 %v1952_v50 }
 0x31d   :  { %1565 = vmatprep.subr.bf16.mxu1 %v1775_v0 }
 0x3d2   :  { %v470_v14 = vpop.f32.mrb[2].mxu1 }
 0x3d3   :  { %v474_v15 = vadd.f32 %v470_v14, %v208_v13  ;;  %v1213_v17 = vpop.f32.mrb[3].mxu1  ;;  %v223_v13 = vadd.f32 %v1968_v58, %v1993_v4 }
 0x3d5   :  { %1247 = vmatmul.mubr.f32.vlgmr.msra.gmra.mrb[10].mxu0 %v474_v15 }
 0x3d6   :  { %1543 = vmatpush3.bf16.msra.mxu0 %v1909_v16  ;;  %1316 = vmatprep.mubr.msk.f32.mxu0 %vm1776_vm0, %v1777_v51  ;;  %v213_v16 = vadd.f32 %v1968_v58, %v1991_v2 }
 0x3d7   :  { %1544 = vmatprep.subr.bf16.mxu0 %v1775_v0 }
 0x3da   :  { %1546 = vmatpush3.bf16.msra.mxu0 %v1912_v20 }
 0x3db   :  { %1547 = vmatprep.subr.bf16.mxu0 %v1775_v0 }
 0x3de   :  { %1549 = vmatpush3.bf16.msra.mxu0 %v1916_v26  ;;  %v1569_v26 = vpack.c.bf16 %v714_v25, %v713_v24 }
 0x3df   :  { %1550 = vmatprep.subr.bf16.mxu0 %v1775_v0 }
 0x3e2   :  { %1552 = vmatpush3.bf16.msra.mxu0 %v1920_v32  ;;  %v1575_v32 = vpack.c.bf16 %v718_v31, %v717_v30 }
 0x3e3   :  { %1553 = vmatprep.subr.bf16.mxu0 %v1775_v0 }
 0x3e6   :  { %1555 = vmatpush3.bf16.msra.mxu0 %v1924_v38  ;;  %v1581_v38 = vpack.c.bf16 %v722_v37, %v721_v36 }
 0x3e7   :  { %1556 = vmatprep.subr.bf16.mxu0 %v1775_v0 }
 0x3ea   :  { %1558 = vmatpush3.bf16.msra.mxu0 %v1928_v43  ;;  %v696_v43 = vld [vmem:[#allocation9 + $0x8] sm:$0xff] }
 0x3eb   :  { %1559 = vmatprep.subr.bf16.mxu0 %v1775_v0 }
 0x3ee   :  { %1561 = vmatpush3.bf16.msra.mxu0 %v1932_v46  ;;  %v1590_v46 = vpack.c.bf16 %v696_v43, %v695_v42 }
 0x3ef   :  { %1562 = vmatprep.subr.bf16.mxu0 %v1775_v0 }
 0x3f2   :  { %1564 = vmatpush3.bf16.msra.mxu0 %v1952_v50  ;;  %v698_v50 = vld [vmem:[#allocation9 + $0x18] sm:$0xff] }
 0x3f3   :  { %1589 = vmatprep.subr.bf16.mxu0 %v1775_v0  ;;  %v1593_v52 = vpack.c.bf16 %v698_v50, %v697_v49 }
 0x4a8   :  { %v543_v18 = vpop.f32.mrb[10].mxu0 }
 0x4a9   :  { %v547_v19 = vadd.f32 %v543_v18, %v213_v16  ;;  %v1248_v20 = vpop.f32.mrb[11].mxu0 }
 0x4ab   :  { %1282 = vmatmul.mubr.f32.vlgmr.msra.gmra.mrb[4].mxu1 %v547_v19 }
 0x4ac   :  { %1351 = vmatprep.mubr.msk.f32.mxu1 %vm1776_vm0, %v1777_v51  ;;  %1567 = vmatpush3.bf16.msra.mxu1 %v1566_v23 }
 0x4ad   :  { %1568 = vmatprep.subr.bf16.mxu1 %v1775_v0 }
 0x4b0   :  { %1570 = vmatpush3.bf16.msra.mxu1 %v1569_v26 }
 0x4b1   :  { %1571 = vmatprep.subr.bf16.mxu1 %v1775_v0 }
 0x4b4   :  { %1573 = vmatpush3.bf16.msra.mxu1 %v1572_v29 }
 0x4b5   :  { %1574 = vmatprep.subr.bf16.mxu1 %v1775_v0 }
 0x4b8   :  { %1576 = vmatpush3.bf16.msra.mxu1 %v1575_v32 }
 0x4b9   :  { %1577 = vmatprep.subr.bf16.mxu1 %v1775_v0 }
 0x4bc   :  { %1579 = vmatpush3.bf16.msra.mxu1 %v1578_v35 }
 0x4bd   :  { %1580 = vmatprep.subr.bf16.mxu1 %v1775_v0 }
 0x4c0   :  { %1582 = vmatpush3.bf16.msra.mxu1 %v1581_v38 }
 0x4c1   :  { %1583 = vmatprep.subr.bf16.mxu1 %v1775_v0 }
 0x4c4   :  { %1585 = vmatpush3.bf16.msra.mxu1 %v1584_v41 }
 0x4c5   :  { %1586 = vmatprep.subr.bf16.mxu1 %v1775_v0 }
 0x4c8   :  { %1588 = vmatpush3.bf16.msra.mxu1 %v1587_v12 }
 0x57e   :  { %v616_v45 = vpop.f32.mrb[4].mxu1 }
 0x57f   :  { %v620_v47 = vadd.f32 %v616_v45, %v218_v44  ;;  %v1283_v48 = vpop.f32.mrb[5].mxu1 }
 0x581   :  { %1317 = vmatmul.mubr.f32.vlgmr.msra.gmra.mrb[12].mxu0 %v620_v47 }
 0x582   :  { %1591 = vmatpush3.bf16.msra.mxu0 %v1590_v46  ;;  %1386 = vmatprep.mubr.msk.f32.mxu0 %vm1776_vm0, %v1777_v51  ;;  %v705_v51 = vld [vmem:[#allocation9 + $0x50] sm:$0xff] }
 0x583   :  { %1592 = vmatprep.subr.bf16.mxu0 %v1775_v0  ;;  %v1605_v2 = vpack.c.bf16 %v706_v1, %v705_v51 }
 0x586   :  { %1594 = vmatpush3.bf16.msra.mxu0 %v1593_v52 }
 0x587   :  { %1595 = vmatprep.subr.bf16.mxu0 %v1775_v0 }
 0x58a   :  { %1597 = vmatpush3.bf16.msra.mxu0 %v1596_v55 }
 0x58b   :  { %1598 = vmatprep.subr.bf16.mxu0 %v1775_v0 }
 0x58e   :  { %1600 = vmatpush3.bf16.msra.mxu0 %v1599_v60 }
 0x58f   :  { %1601 = vmatprep.subr.bf16.mxu0 %v1775_v0 }
 0x592   :  { %1603 = vmatpush3.bf16.msra.mxu0 %v1602_v63 }
 0x593   :  { %1604 = vmatprep.subr.bf16.mxu0 %v1775_v0 }
 0x596   :  { %1606 = vmatpush3.bf16.msra.mxu0 %v1605_v2 }
 0x597   :  { %1607 = vmatprep.subr.bf16.mxu0 %v1775_v0 }
 0x59a   :  { %1609 = vmatpush3.bf16.msra.mxu0 %v1608_v6 }
 0x59b   :  { %1610 = vmatprep.subr.bf16.mxu0 %v1775_v0  ;;  %v904_v0 = vld [vmem:[%s2098_s6] ss:$0 sm:$0xff]  ;;  %s1738_s6 = scalar_lea.vmem %s893_s27, 128 }
 0x59c   :  { %p1739_p12 = scmp.ne.s32.totalorder %s893_s27, %s1738_s6  ;;  %p1744_p0 = scmp.lt.s32.totalorder %s1738_s6, %s1738_s6 }
 0x59e   :  { %1612 = vmatpush3.bf16.msra.mxu0 %v1611_v9  ;;  %p1745_p1 = por %p1744_p0, %p1743_p13 }
 0x5a0   :  { %p1746_p2 = pnand %p1745_p1, %p1739_p12 }
 0x5a1   :  { %1387 = vmatmul.mubr.f32.vlgmr.msra.gmra.mrb[14].mxu0 %v1960_v57 }
 0x654   :  { %v689_v14 = vpop.f32.mrb[12].mxu0 }
 0x655   :  { %v693_v15 = vadd.f32 %v689_v14, %v223_v13  ;;  %v1318_v17 = vpop.f32.mrb[13].mxu0 }
 0x657   :  { %1352 = vmatmul.mubr.f32.vlgmr.msra.gmra.mrb[6].mxu1 %v693_v15 }
 0x674   :  { %v863_v16 = vpop.f32.mrb[14].mxu0 }
 0x675   :  { %v1388_v18 = vpop.f32.mrb[15].mxu0 }
 0x72a   :  { %v793_v19 = vpop.f32.mrb[6].mxu1 }
 0x72b   :  { %v864_v20 = vadd.f32 %v863_v16, %v793_v19  ;;  %v1353_v57 = vpop.f32.mrb[7].mxu1 }
 0x72d   :  { %v874_v21 = vadd.f32 %v904_v0, %v864_v20 }
 0x72f   :  { %875 = vmax.xlane.f32.xlu0 %v874_v21 }
 0x7bc   :  { %v876_v22 = vpop.xlane.xlu0 %875 }
 0x7bd   :  { %v877_v23 = vsub.f32 %v874_v21, %v876_v22 }
 0x7bf   :  { %v878_v24 = vmul.f32 1.442695, %v877_v23 }
 0x7c1   :  { %1624 = vpow2.f32 %v878_v24 }
 0x7cb   :  { %v1625_v58 = vpop.eup %1624 }
 0x7cc   :  { %880 = vadd.xlane.f32.xlu0 %v1625_v58 }
 0x859   :  { %v881_v4 = vpop.xlane.xlu0 %880 }
 0x85a   :  { %1626 = vlog2.f32 %v881_v4 }
 0x864   :  { %v1627_v25 = vpop.eup %1626 }
 0x865   :  { %v883_v26 = vmul.f32 0.6931472, %v1627_v25 }
 0x867   :  { %v884_v27 = vsub.f32 %v877_v23, %v883_v26 }
 0x869   :  { %885 = vst [vmem:[#allocation12] sm:$0xff] %v884_v27 }
 0x86a   :  { %1749 = shalt.err (!%p1746_p2)
}
 0x86b   :  { %s1750_s19 = scalar_lea.hbm %s2099_s7, 128 }
 0x86c   :  { %p1751_p3 = scmp.ne.s32.totalorder %s2099_s7, %s1750_s19  ;;  %p1754_p4 = scmp.lt.u32.totalorder %s1750_s19, %s2099_s7 }
 0x86e   :  { %p1756_p5 = pnand %p1754_p4, %p1751_p3 }
 0x870   :  { %1759 = shalt.err (!%p1756_p5)
}
 0x871   :  { %895 = dma.vmem_to_hbm [thread:$0]  %s893_s27, 128, %s2099_s7, [#allocation5]  }
 0x872   :  { %1766 = dma.done.wait [#allocation5], 128  }
 0x873   :  { %1767 = vsyncadd [#allocation5], 4294967168 }
 0x874   :  { %899 = vsyncpa [#allocation4], 1 }
 0x875   :  { %900 = vsyncpa [#allocation7], 1 }
 0x876   :  { %901 = vsyncpa [#allocation10], 1 }
 0x877   :  { %902 = vsyncpa [#allocation5], 1 }

</bundles_post_ra>
